<compile_context>
chip_gen: v6e
topology: v6e:2x2x1
jax: 0.10.0
libtpu: 0.0.40
codegen_flags: <defaults>
</compile_context>

<pallas_src>
import functools

import jax
import jax.numpy as jnp
from jax.experimental import pallas as pl
from jax.experimental.pallas import tpu as pltpu


def _bmm_kernel(h_ref, mf_ref, out_ref):
    # h_ref:   (1, Qp, Hd)   projected (and scaled) queries
    # mf_ref:  (1, Hd, thw)  spatial tile of flattened mask features
    # out_ref: (1, Qp, thw)  spatial tile of output mask logits
    acc = jnp.dot(h_ref[0], mf_ref[0], preferred_element_type=jnp.float32)
    out_ref[0] = acc.astype(out_ref.dtype)


def _round_up(x, m):
    return (x + m - 1) // m * m


def _tpu_vmem_capacity_bytes():
    try:
        info = pltpu.get_tpu_info()
        cap = getattr(info, "vmem_capacity_bytes", None)
        if cap:
            return int(cap)
    except Exception:
        pass
    return 64 * 1024 * 1024  # conservative: v7x per-TensorCore VMEM


def _choose_tiling(HW, Hd, Qp, mf_itemsize, out_itemsize):
    vmem_cap = _tpu_vmem_capacity_bytes()
    # Keep the scoped limit comfortably under physical VMEM:
    #   v7x (64 MiB) -> 56 MiB ; v5e/v6e (128 MiB) -> 100 MiB.
    vmem_limit = int(min(vmem_cap - 8 * 1024 * 1024, 100 * 1024 * 1024))
    tile_budget = (vmem_limit * 3) // 4
    max_thw = 16384 if vmem_cap <= 64 * 1024 * 1024 else 32768

    hw_p128 = _round_up(HW, 128)
    # Double-buffered mf tile + double-buffered output tile, per spatial column.
    per_col = 2 * (Hd * mf_itemsize + Qp * out_itemsize)
    cand = (tile_budget // per_col) // 128 * 128
    cand = max(128, min(cand, max_thw, hw_p128))
    n_hw = pl.cdiv(hw_p128, cand)
    thw = _round_up(pl.cdiv(hw_p128, n_hw), 128)  # even tiles, minimal padding
    hw_p = n_hw * thw
    return thw, n_hw, hw_p, vmem_limit


def mask_predictor_forward(queries, mask_features, params, *,
                           mf_dtype=None, out_dtype=None):
    """queries: (B, Q, Dq); mask_features: (B, Hd, H, W) -> masks (B, Q, H, W)."""
    w1, b1, w2, b2, scale = (params["w1"], params["b1"], params["w2"],
                             params["b2"], params["scale"])
    B, Q, Dq = queries.shape
    Bm, Hd, H, W = mask_features.shape
    assert Bm == B
    HW = H * W

    compute_dtype = (jnp.dtype(mf_dtype) if mf_dtype is not None
                     else mask_features.dtype)
    out_dt = jnp.dtype(out_dtype) if out_dtype is not None else compute_dtype

    # Tiny projection hoisted out of the kernel (per perf review: it would
    # otherwise be recomputed once per spatial tile).
    s = jax.nn.sigmoid(scale)[0]
    h = queries.astype(jnp.float32) @ w1 + b1
    h = (h @ w2 + b2) * s                                   # (B, Q, Hd), f32
    h = h.astype(compute_dtype)

    # Pad Q so output tiles are sublane-aligned for the output dtype.
    q_align = 16 if jnp.dtype(out_dt).itemsize < 4 else 8
    Qp = _round_up(Q, q_align)
    if Qp != Q:
        h = jnp.pad(h, ((0, 0), (0, Qp - Q), (0, 0)))

    thw, n_hw, HWp, vmem_limit = _choose_tiling(
        HW, Hd, Qp, jnp.dtype(compute_dtype).itemsize, jnp.dtype(out_dt).itemsize)

    # Flatten spatial dims. No standalone HBM cast pass unless a different
    # streaming dtype was explicitly requested by the caller.
    mf_flat = mask_features.reshape(B, Hd, HW)
    if mf_flat.dtype != compute_dtype:
        mf_flat = mf_flat.astype(compute_dtype)
    if HWp != HW:
        mf_flat = jnp.pad(mf_flat, ((0, 0), (0, 0), (0, HWp - HW)))

    out = pl.pallas_call(
        _bmm_kernel,
        out_shape=jax.ShapeDtypeStruct((B, Qp, HWp), out_dt),
        grid_spec=pltpu.PrefetchScalarGridSpec(
            num_scalar_prefetch=0,
            # Spatial axis leads so the v7x megacore split lands on the large,
            # evenly divisible axis even when B is 1 or 2.
            grid=(n_hw, B),
            in_specs=[
                pl.BlockSpec((1, Qp, Hd), lambda t, b: (b, 0, 0)),    # h
                pl.BlockSpec((1, Hd, thw), lambda t, b: (b, 0, t)),   # mf tile
            ],
            out_specs=pl.BlockSpec((1, Qp, thw), lambda t, b: (b, 0, t)),
        ),
        compiler_params=pltpu.CompilerParams(
            dimension_semantics=("parallel", "parallel"),
            vmem_limit_bytes=vmem_limit),
    )(h, mf_flat)

    if Qp != Q or HWp != HW:
        out = out[:, :Q, :HW]
    return out.reshape(B, Q, H, W)


def _reference_forward(queries, mask_features, params):
    """Pure-JAX reference mirroring the PyTorch module (f32, high precision)."""
    q = queries @ params["w1"] + params["b1"]
    q = q @ params["w2"] + params["b2"]
    q = q * jax.nn.sigmoid(params["scale"])[0]
    B, Hd, H, W = mask_features.shape
    mf = mask_features.reshape(B, Hd, H * W)
    masks = jnp.einsum("bqh,bhs->bqs", q, mf, precision="highest")
    return masks.reshape(B, -1, H, W)


def init_params(key, query_dim, hidden_dim):
    k1, k2, k3, k4 = jax.random.split(key, 4)
    bound1 = 1.0 / jnp.sqrt(query_dim)
    bound2 = 1.0 / jnp.sqrt(hidden_dim)
    # Stored as (in, out), i.e. transpose of PyTorch's (out, in) layout.
    w1 = jax.random.uniform(k1, (query_dim, hidden_dim), jnp.float32, -bound1, bound1)
    b1 = jax.random.uniform(k2, (hidden_dim,), jnp.float32, -bound1, bound1)
    w2 = jax.random.uniform(k3, (hidden_dim, hidden_dim), jnp.float32, -bound2, bound2)
    b2 = jax.random.uniform(k4, (hidden_dim,), jnp.float32, -bound2, bound2)
    scale = jnp.ones((1,), jnp.float32) * 20.0
    return {"w1": w1, "b1": b1, "w2": w2, "b2": b2, "scale": scale}


if __name__ == "__main__":
    key = jax.random.PRNGKey(0)
    kq, kmf, kp = jax.random.split(key, 3)

    B, Q, query_dim, hidden_dim, H, W = 2, 8, 32, 32, 16, 16

    queries = jax.random.normal(kq, (B, Q, query_dim), jnp.float32)
    mask_features = jax.random.normal(kmf, (B, hidden_dim, H, W), jnp.float32)
    params = init_params(kp, query_dim, hidden_dim)

    ref = _reference_forward(queries, mask_features, params)

    # Default path: stream mask_features in their incoming dtype (f32), f32 out.
    fwd_f32 = jax.jit(mask_predictor_forward)
    masks_f32 = jax.block_until_ready(fwd_f32(queries, mask_features, params))
    assert masks_f32.shape == (B, Q, H, W)
    assert jnp.allclose(masks_f32, ref, atol=5e-2, rtol=2e-2), "f32 path mismatch"

    # Fast path: bf16 streaming + bf16 output (halves dominant HBM traffic when
    # the producer hands over / the consumer accepts bf16).
    fwd_bf16 = jax.jit(functools.partial(
        mask_predictor_forward, mf_dtype=jnp.bfloat16, out_dtype=jnp.bfloat16))
    masks_bf16 = jax.block_until_ready(fwd_bf16(queries, mask_features, params))
    assert masks_bf16.shape == (B, Q, H, W)
    assert masks_bf16.dtype == jnp.bfloat16
    assert jnp.allclose(masks_bf16.astype(jnp.float32), ref, atol=0.15, rtol=0.1), \
        "bf16 path mismatch"

    # TODO(synk): optional fp8(e4m3) mask-feature streaming on v7x (per-channel
    # scale) not implemented; needs accuracy validation on real checkpoints.
    print("KERNEL_OK")
</pallas_src>

<mosaic_0001>
module attributes {stable_mosaic.version = 11 : i64} {
  func.func @_bmm_kernel(%arg0: i32, %arg1: i32, %arg2: memref<1x8x32xf32, #tpu.memory_space<vmem>>, %arg3: memref<1x32x256xf32, #tpu.memory_space<vmem>>, %arg4: memref<1x8x256xf32, #tpu.memory_space<vmem>>) attributes {dimension_semantics = [#tpu.dimension_semantics<parallel>, #tpu.dimension_semantics<parallel>], iteration_bounds = array<i64: 1, 2>, scalar_prefetch = 0 : i64, scratch_operands = 0 : i64, tpu.core_type = #tpu.core_type<tc>, window_params = [{transform_indices = @transform_0, window_bounds = array<i64: 1, 8, 32>}, {transform_indices = @transform_1, window_bounds = array<i64: 1, 32, 256>}, {transform_indices = @transform_2, window_bounds = array<i64: 1, 8, 256>}]} {
    %c0 = arith.constant 0 : index
    %c0_0 = arith.constant 0 : index
    %c0_1 = arith.constant 0 : index
    %0 = vector.load %arg2[%c0, %c0_0, %c0_1] : memref<1x8x32xf32, #tpu.memory_space<vmem>>, vector<1x8x32xf32>
    %1 = vector.shape_cast %0 : vector<1x8x32xf32> to vector<8x32xf32>
    %c0_2 = arith.constant 0 : index
    %c0_3 = arith.constant 0 : index
    %c0_4 = arith.constant 0 : index
    %2 = vector.load %arg3[%c0_2, %c0_3, %c0_4] : memref<1x32x256xf32, #tpu.memory_space<vmem>>, vector<1x32x256xf32>
    %3 = vector.shape_cast %2 : vector<1x32x256xf32> to vector<32x256xf32>
    %cst = arith.constant dense<0.000000e+00> : vector<8x256xf32>
    %4 = tpu.matmul %1, %3, %cst {dimension_numbers = #tpu.dot_dimension_numbers<[1], [0], [0], [1], [0, 0, 1, 1], [], []>} : vector<8x32xf32>, vector<32x256xf32>, vector<8x256xf32> -> vector<8x256xf32>
    %c0_5 = arith.constant 0 : index
    %c0_6 = arith.constant 0 : index
    %c0_7 = arith.constant 0 : index
    %5 = vector.load %arg4[%c0_5, %c0_6, %c0_7] : memref<1x8x256xf32, #tpu.memory_space<vmem>>, vector<1x8x256xf32>
    %6 = vector.shape_cast %5 : vector<1x8x256xf32> to vector<8x256xf32>
    %7 = vector.shape_cast %4 : vector<8x256xf32> to vector<1x8x256xf32>
    tpu.vector_store %arg4[%c0_5, %c0_6, %c0_7], %7 {strides = array<i32>} : memref<1x8x256xf32, #tpu.memory_space<vmem>>, vector<1x8x256xf32>,
    return
  }
  func.func @transform_0(%arg0: i32, %arg1: i32) -> (i32, i32, i32) {
    %c0_i32 = arith.constant 0 : i32
    %c0_i32_0 = arith.constant 0 : i32
    %c0_i32_1 = arith.constant 0 : i32
    return %arg1, %c0_i32, %c0_i32_0 : i32, i32, i32
  }
  func.func @transform_1(%arg0: i32, %arg1: i32) -> (i32, i32, i32) {
    %c0_i32 = arith.constant 0 : i32
    %c0_i32_0 = arith.constant 0 : i32
    return %arg1, %c0_i32, %arg0 : i32, i32, i32
  }
  func.func @transform_2(%arg0: i32, %arg1: i32) -> (i32, i32, i32) {
    %c0_i32 = arith.constant 0 : i32
    %c0_i32_0 = arith.constant 0 : i32
    return %arg1, %c0_i32, %arg0 : i32, i32, i32
  }
}

</mosaic_0001>

<bundles_post_ra>
// kernel: mask_predictor_forward.1
= control target key start
LH: loop header
LB: loop body
LE: loop exit
PB: predicated region body
PF: predicated region fallthrough
CT: control target
= control target key end

     0   :  { %s465_s9 = smov 0   ;;  %s467_s10 = smov 0   ;;  %s501_s0 = inlined_call_operand.vmem [shape: f32[2,8,32], index: 0, kind: input, shape index: {}]   ;;  %s502_s1 = inlined_call_operand.vmem [shape: f32[2,32,256], index: 1, kind: input, shape index: {}]   ;;  %s503_s2 = inlined_call_operand.vmem [shape: f32[2,8,256], index: 2, kind: output, shape index: {}]  }
   0x1   :  { %s469_s11 = smov 0  }
   0x2 LB: > { %s21_s12 = sadd.s32 1, %s443_s10  ;;  %p389_p0 = scmp.ge.s32.totalorder %s447_s11, 1  ;;  %s447_s11 = sphi %s469_s11, %s12_s11   ;;  %s443_s10 = sphi %s467_s10, %s505_s10   ;;  %s439_s9 = sphi %s465_s9, %s504_s9  }
   0x3   : > { %p22_p1 = scmp.ge.s32.totalorder %s21_s12, 2  ;;  %p142_p2 = scmp.lt.s32.totalorder %s447_s11, 3 }
   0x5   : > { %s507_s12 = smov (%p22_p1, %s21_s12), 0  ;;  %p143_p3 = pnand %p389_p0, %p142_p2 }
   0x6   : > { %p176_p4 = scmp.lt.s32.totalorder (!%p143_p3), %s439_s9, 1 }
   0x7   : > { %146 = sbr.rel (%p143_p3) target bundleno = 220 (0xdc), region = 28 }
   0xc   : > { %v449_v0 = vmov 0.0   ;;  %s509_s9 = smov (!%p176_p4, %s439_s9), 1  ;;  %vm209_vm0 = vcmask 261120  }
   0xd   : > { %277 = vmatprep.mubr.f32.mxu0 %v449_v0  ;;  %s398_s13 = sshll.u32 %s509_s9, 6  ;;  %s390_s17 = sshll.u32 %s509_s9, 3 }
   0xe   : > { %s188_s16 = scalar_lea.vmem %s502_s1, %s398_s13  ;;  %s179_s20 = scalar_lea.vmem %s501_s0, %s390_s17 }
   0xf   : > { %v208_v1 = vld [vmem:[%s188_s16 + $0x38] sm:$0xff]  ;;  %v207_v2 = vld [vmem:[%s188_s16 + $0x30] sm:$0xff]  ;;  %v206_v3 = vld [vmem:[%s188_s16 + $0x28] sm:$0xff]  ;;  %s399_s21 = sshll.u32 %s509_s9, 4 }
  0x10   : > { %237 = vmatprep.subr.mxu0 %v208_v1  ;;  %v205_v4 = vld [vmem:[%s188_s16 + $0x20] sm:$0xff]  ;;  %v204_v5 = vld [vmem:[%s188_s16 + $0x18] sm:$0xff]  ;;  %v203_v6 = vld [vmem:[%s188_s16 + $0x10] sm:$0xff]  ;;  %s198_s24 = scalar_lea.vmem %s503_s2, %s399_s21 }
  0x11   : > { %238 = vmatpush1.msra.mxu0 %v207_v2  ;;  %v202_v7 = vld [vmem:[%s188_s16 + $0x8] sm:$0xff]  ;;  %v201_v8 = vld [vmem:[%s188_s16] sm:$0xff] }
  0x12   : > { %239 = vmatprep.subr.mxu0 %v206_v3  ;;  %v200_v9 = vld [vmem:[%s179_s20] sm:$0xff] }
  0x13   : > { %240 = vmatpush1.msra.mxu0 %v205_v4 }
  0x14   : > { %241 = vmatprep.subr.mxu0 %v204_v5 }
  0x15   : > { %242 = vmatpush1.msra.mxu0 %v203_v6 }
  0x16   : > { %243 = vmatprep.subr.mxu0 %v202_v7 }
  0x17   : > { %244 = vmatpush1.msra.mxu0 %v201_v8 }
  0x18   : > { %395 = vmatmul.mubr.msk.f32.vlgmr.msra.gmra.mxu0 %vm209_vm0, %v200_v9 }
  0xd8   : > { %v279_v10 = vpop.f32.mrf.mxu0 }
  0xd9   : > { %284 = vst [vmem:[%s198_s24] sm:$0xff] %v279_v10 }
  0xda   : > { %v281_v11 = vpop.f32.mrf.mxu0 }
  0xdb   : > { %285 = vst [vmem:[%s198_s24 + $0x8] sm:$0xff] %v281_v11 }
  0xdc PF: > { %s12_s11 = sadd.s32 1, %s447_s11   ;;  %s504_s9 = smov %s443_s10 }
  0xdd   : > { %p9_p5 = scmp.ge.s32.totalorder %s12_s11, 4   ;;  %s505_s10 = smov %s507_s12 }
  0xdf   :  { %11 = sbr.rel (!%p9_p5) target bundleno = 2 (0x2), region = 61 }

</bundles_post_ra>
